<compile_context>
chip_gen: v7x
topology: tpu7x:2x2x1
jax: 0.10.0
libtpu: 0.0.40
codegen_flags: <defaults>
</compile_context>

<pallas_src>
import jax
import jax.numpy as jnp
from jax.experimental import pallas as pl
from jax.experimental.pallas import tpu as pltpu


_LANE = 128
_SUBLANE = 8
_TARGET_BLOCK_BYTES = 4 * 1024 * 1024   # ~4 MiB data blocks: double-buffered
                                         # in+out stays < ~20 MiB on every gen
_VMEM_LIMIT_BYTES = 48 * 1024 * 1024     # fits v7x's 64 MiB physical VMEM,
                                         # raises v5e/v6e scoped defaults


def _round_up(x, m):
    return (x + m - 1) // m * m


def _pick_tiles(R, S, itemsize):
    """Choose (tr, ts): multiples of (8, 128), ~_TARGET_BLOCK_BYTES per block."""
    # Lane tile: take the whole (rounded-up) row if it fits the budget at 8 rows.
    max_ts = max(_LANE,
                 (_TARGET_BLOCK_BYTES // (itemsize * _SUBLANE)) // _LANE * _LANE)
    ts = min(_round_up(S, _LANE), max_ts)
    # Row tile: fill the remaining block budget.
    max_tr = max(_SUBLANE,
                 (_TARGET_BLOCK_BYTES // (itemsize * ts)) // _SUBLANE * _SUBLANE)
    tr = min(_round_up(R, _SUBLANE), max_tr)
    # v7x has 2 TensorCores: make sure the parallel grid has >= 2 steps when a
    # tile can be split cheaply (no-op for v5e/v6e, harmless for tiny inputs).
    if pl.cdiv(R, tr) * pl.cdiv(S, ts) < 2:
        if tr > _SUBLANE:
            tr = _round_up(tr // 2, _SUBLANE)
        elif ts > _LANE:
            ts = _round_up(ts // 2, _LANE)
    return tr, ts


def _affine_clip_sigmoid_kernel(x_ref, w_ref, b_ref, o_ref):
    # x_ref: (tr, ts) tile of the flattened pixels
    # w_ref / b_ref: (tr, 1) per-row scale / shift (the /3 already folded in)
    y = x_ref[...] * w_ref[...] + b_ref[...]
    y = jnp.clip(y, 0.0, 6.0)
    o_ref[...] = jax.nn.sigmoid(y)


def model_forward(x, conv_w, conv_b):
    """Depthwise (groups=C) 1x1 Conv2d -> /3 -> clip(0,6) -> sigmoid.

    x: (N, C, H, W) float32; conv_w, conv_b: (C,). Returns (N, C, H, W).
    """
    N, C, H, W = x.shape
    R, S = N * C, H * W
    itemsize = jnp.dtype(x.dtype).itemsize

    tr, ts = _pick_tiles(R, S, itemsize)
    grid = (pl.cdiv(R, tr), pl.cdiv(S, ts))

    # Free reshape (contiguous NCHW flatten); no padding, no extra HBM passes.
    x2d = x.reshape(R, S)

    # Fold the module's /3 into the 3-element conv params (scalar-side, free),
    # then expand to per-row columns (row index = n*C + c -> channel c).
    w_eff = (conv_w / 3.0).astype(x.dtype)
    b_eff = (conv_b / 3.0).astype(x.dtype)
    w_rows = jnp.tile(w_eff, N).reshape(R, 1)
    b_rows = jnp.tile(b_eff, N).reshape(R, 1)

    cost = pl.CostEstimate(
        flops=5 * R * S,               # mul + add + clip (+ sigmoid glue)
        transcendentals=R * S,         # sigmoid -> exp on the EUP
        bytes_accessed=(2 * R * S + 2 * R) * itemsize,
    )

    out2d = pl.pallas_call(
        _affine_clip_sigmoid_kernel,
        out_shape=jax.ShapeDtypeStruct((R, S), x.dtype),
        grid_spec=pltpu.PrefetchScalarGridSpec(
            num_scalar_prefetch=0,
            grid=grid,
            in_specs=[
                pl.BlockSpec((tr, ts), lambda i, j: (i, j)),
                pl.BlockSpec((tr, 1), lambda i, j: (i, 0)),
                pl.BlockSpec((tr, 1), lambda i, j: (i, 0)),
            ],
            out_specs=pl.BlockSpec((tr, ts), lambda i, j: (i, j)),
        ),
        compiler_params=pltpu.CompilerParams(
            dimension_semantics=("parallel", "parallel"),
            vmem_limit_bytes=_VMEM_LIMIT_BYTES,
        ),
        cost_estimate=cost,
    )(x2d, w_rows, b_rows)

    return out2d.reshape(N, C, H, W)


if __name__ == "__main__":
    key = jax.random.PRNGKey(0)
    k_x, k_w, k_b = jax.random.split(key, 3)

    N, C, H, W = 2, 3, 16, 16
    x = jax.random.normal(k_x, (N, C, H, W), dtype=jnp.float32)

    # Conv2d(3,3,1,groups=3) params: weight (3,1,1,1) -> (3,), bias (3,).
    # PyTorch-style uniform init bound = 1/sqrt(fan_in) = 1 (fan_in = 1*1*1).
    conv_w = jax.random.uniform(k_w, (C,), minval=-1.0, maxval=1.0, dtype=jnp.float32)
    conv_b = jax.random.uniform(k_b, (C,), minval=-1.0, maxval=1.0, dtype=jnp.float32)

    out = model_forward(x, conv_w, conv_b)
    jax.block_until_ready(out)

    # Sanity check against a pure-JAX reference of the PyTorch graph.
    ref = jax.nn.sigmoid(
        jnp.clip(
            (x * conv_w[None, :, None, None] + conv_b[None, :, None, None]) / 3.0,
            0.0,
            6.0,
        )
    )
    assert out.shape == (N, C, H, W)
    assert jnp.allclose(out, ref, atol=1e-6), "mismatch vs reference"

    print("KERNEL_OK")
</pallas_src>

<mosaic_0001>
module attributes {stable_mosaic.version = 11 : i64} {
  func.func @_affine_clip_sigmoid_kernel(%arg0: i32, %arg1: i32, %arg2: memref<8x128xf32, #tpu.memory_space<vmem>>, %arg3: memref<8x1xf32, #tpu.memory_space<vmem>>, %arg4: memref<8x1xf32, #tpu.memory_space<vmem>>, %arg5: memref<8x128xf32, #tpu.memory_space<vmem>>) attributes {dimension_semantics = [#tpu.dimension_semantics<parallel>, #tpu.dimension_semantics<parallel>], iteration_bounds = array<i64: 1, 2>, scalar_prefetch = 0 : i64, scratch_operands = 0 : i64, tpu.core_type = #tpu.core_type<tc>, window_params = [{transform_indices = @transform_0, window_bounds = array<i64: 8, 128>}, {transform_indices = @transform_1, window_bounds = array<i64: 8, 1>}, {transform_indices = @transform_2, window_bounds = array<i64: 8, 1>}, {transform_indices = @transform_3, window_bounds = array<i64: 8, 128>}]} {
    %c0 = arith.constant 0 : index
    %c0_0 = arith.constant 0 : index
    %0 = vector.load %arg2[%c0, %c0_0] : memref<8x128xf32, #tpu.memory_space<vmem>>, vector<8x128xf32>
    %c0_1 = arith.constant 0 : index
    %c0_2 = arith.constant 0 : index
    %1 = vector.load %arg3[%c0_1, %c0_2] : memref<8x1xf32, #tpu.memory_space<vmem>>, vector<8x1xf32>
    %2 = vector.broadcast %1 : vector<8x1xf32> to vector<8x128xf32>
    %3 = arith.mulf %0, %2 : vector<8x128xf32>
    %c0_3 = arith.constant 0 : index
    %c0_4 = arith.constant 0 : index
    %4 = vector.load %arg4[%c0_3, %c0_4] : memref<8x1xf32, #tpu.memory_space<vmem>>, vector<8x1xf32>
    %5 = vector.broadcast %4 : vector<8x1xf32> to vector<8x128xf32>
    %6 = arith.addf %3, %5 : vector<8x128xf32>
    %cst = arith.constant 0.000000e+00 : f32
    %cst_5 = arith.constant 6.000000e+00 : f32
    %7 = vector.broadcast %cst : f32 to vector<8x128xf32>
    %8 = arith.maximumf %7, %6 : vector<8x128xf32>
    %9 = vector.broadcast %cst_5 : f32 to vector<8x128xf32>
    %10 = arith.minimumf %9, %8 : vector<8x128xf32>
    %11 = arith.negf %10 : vector<8x128xf32>
    %12 = math.exp %11 : vector<8x128xf32>
    %cst_6 = arith.constant 1.000000e+00 : f32
    %13 = vector.broadcast %cst_6 : f32 to vector<8x128xf32>
    %14 = arith.addf %13, %12 : vector<8x128xf32>
    %15 = arith.divf %13, %14 : vector<8x128xf32>
    %c0_7 = arith.constant 0 : index
    %c0_8 = arith.constant 0 : index
    %16 = vector.load %arg5[%c0_7, %c0_8] : memref<8x128xf32, #tpu.memory_space<vmem>>, vector<8x128xf32>
    tpu.vector_store %arg5[%c0_7, %c0_8], %15 {strides = array<i32>} : memref<8x128xf32, #tpu.memory_space<vmem>>, vector<8x128xf32>,
    return
  }
  func.func @transform_0(%arg0: i32, %arg1: i32) -> (i32, i32) {
    %c0_i32 = arith.constant 0 : i32
    return %arg0, %arg1 : i32, i32
  }
  func.func @transform_1(%arg0: i32, %arg1: i32) -> (i32, i32) {
    %c0_i32 = arith.constant 0 : i32
    %c0_i32_0 = arith.constant 0 : i32
    return %arg0, %c0_i32 : i32, i32
  }
  func.func @transform_2(%arg0: i32, %arg1: i32) -> (i32, i32) {
    %c0_i32 = arith.constant 0 : i32
    %c0_i32_0 = arith.constant 0 : i32
    return %arg0, %c0_i32 : i32, i32
  }
  func.func @transform_3(%arg0: i32, %arg1: i32) -> (i32, i32) {
    %c0_i32 = arith.constant 0 : i32
    return %arg0, %arg1 : i32, i32
  }
}

</mosaic_0001>

<bundles_post_ra>
// kernel: tpu_custom_call.1
= control target key start
LH: loop header
LB: loop body
LE: loop exit
PB: predicated region body
PF: predicated region fallthrough
CT: control target
= control target key end

     0   :  { %8 = vsyncpa [#allocation3], 0  ;;  %s668_s0 = inlined_call_operand.vmem [shape: f32[6,256], index: 0, kind: input, shape index: {}]   ;;  %s669_s1 = inlined_call_operand.vmem [shape: f32[6,1], index: 1, kind: input, shape index: {}]   ;;  %s670_s2 = inlined_call_operand.vmem [shape: f32[6,1], index: 2, kind: input, shape index: {}]   ;;  %s671_s3 = inlined_call_operand.hbm [shape: f32[6,256], index: 3, kind: output, shape index: {}]  }
   0x1   :  { %10 = vsyncpa [#allocation3 + $0x1], 0  ;;  %s550_s12 = smov 0   ;;  %s552_s13 = smov 0  }
   0x2   :  { %s554_s14 = smov 0   ;;  %s556_s15 = smov 0  }
   0x3   :  { %s558_s16 = smov 0   ;;  %s560_s17 = smov 0  }
   0x4 LB: > { %s373_s18 = sadd.s32 4294967295, %s526_s17   ;;  %s374_s19 = sadd.s32 4294967294, %s526_s17   ;;  %s526_s17 = sphi %s560_s17, %s16_s17   ;;  %s522_s16 = sphi %s558_s16, %s678_s16   ;;  %s518_s15 = sphi %s556_s15, %s677_s15   ;;  %s514_s14 = sphi %s554_s14, %s676_s14   ;;  %s510_s13 = sphi %s552_s13, %s675_s13   ;;  %s506_s12 = sphi %s550_s12, %s674_s12  }
   0x5   : > { %s25_s20 = sadd.s32 1, %s522_s16  ;;  %s117_s21 = sadd.s32 1, %s514_s14 }
   0x6   : > { %p26_p0 = scmp.ge.s32.totalorder %s25_s20, 2  ;;  %p127_p1 = scmp.ne.s32.totalorder %s514_s14, %s510_s13 }
   0x7   : > { %p128_p2 = scmp.eq.s32.totalorder %s373_s18, 1  ;;  %p133_p3 = scmp.ne.s32.totalorder %s510_s13, %s506_s12 }
   0x8   : > { %s680_s20 = smov (%p26_p0, %s25_s20), 0  ;;  %p134_p5 = scmp.eq.s32.totalorder %s374_s19, 1 }
   0x9   : > { %p590_p4 = por %p128_p2, %p127_p1  ;;  %s113_s23 = ssub.s32 %s522_s16, %s680_s20 }
   0xa   : > { %p379_p6 = scmp.ge.s32.totalorder %s526_s17, 1  ;;  %p115_p7 = scmp.eq.s32.totalorder %s113_s23, 0 }
   0xb   : > { %p597_p8 = por %p134_p5, %p133_p3  ;;  %p177_p9 = scmp.lt.s32.totalorder %s526_s17, 3 }
   0xc   : > { %s603_s25 = scalar_select %p115_p7, %s514_s14, %s117_s21  }
   0xd   : > { %p178_p10 = pnand %p379_p6, %p177_p9 }
   0xe   : > { %v229_v0 = vld [vmem:[%s669_s1] sm:$0xff] (!%p178_p10)  ;;  %v528_v1 = vmov (!%p178_p10), 0   ;;  %p214_p11 = scmp.lt.s32.totalorder (!%p178_p10), %s518_s15, 1  ;;  %s209_s8 = sand.u32 (!%p178_p10), 1, %s510_s13  }
   0xf   : > { %181 = sbr.rel (%p178_p10) target bundleno = 194 (0xc2), region = 32  ;;  %443 = vset.pattern.permute.xlu0 (!%p178_p10), %v528_v1  ;;  %v236_v2 = vld [vmem:[%s670_s2] sm:$0xff] (!%p178_p10)  ;;  %s380_s9 = sshll.u32 (!%p178_p10), %s209_s8, 3 }
  0x10   : > { %232 = vperm.xlu0 (!%p178_p10), %443, %v229_v0   ;;  %s384_s10 = sshll.u32 (!%p178_p10), %s518_s15, 7  ;;  %s211_s11 = scalar_lea.vmem (!%p178_p10), [#allocation2], %s380_s9 }
  0x11   : > { %s268_s18 = sshll.u32 (!%p178_p10), %s211_s11, 4  ;;  %s621_s23 = scalar_lea.hbm (!%p178_p10), %s671_s3, %s384_s10  ;;  %s623_s18 = int_to_ptr.vmem [resolvable:$true] %s268_s18 }
  0x12   : > { %s253_s26 = scalar_lea.sflag (!%p178_p10), [#allocation3], %s209_s8  ;;  %s448_s27 = scalar_lea.vmem (!%p178_p10), %s623_s18, 128 }
  0x13   : > { %p449_p12 = scmp.ne.s32.totalorder (!%p178_p10), %s623_s18, %s448_s27 }
  0x14   : > { %239 = vperm.xlu0 (!%p178_p10), %443, %v236_v2  }
  0x15   : > { %p450_p13 = pnand (!%p178_p10), %p449_p12, %p590_p4 }
  0x16   : > { %s215_s30 = scalar_select %p214_p11, %s518_s15, 1 }
  0x17   : > { %p451_p0 = pneg %p450_p13  ;;  %s529_s15 = smov [#allocation2]  }
  0x18   : > { %s381_s4 = sshll.u32 %s215_s30, 3  ;;  %s452_s28 = sshll.u32 %s529_s15, 4  ;;  %s453_s28 = int_to_ptr.vmem [resolvable:$false] %s452_s28 }
  0x19   : > { %s219_s7 = scalar_lea.vmem %s668_s0, %s381_s4  ;;  %s454_s29 = scalar_lea.vmem %s453_s28, 256 }
  0x1a   : > { %v228_v4 = vld [vmem:[%s219_s7] sm:$0xff]  ;;  %p455_p1 = scmp.lt.s32.totalorder %s623_s18, %s453_s28  ;;  %p456_p2 = scmp.lt.s32.totalorder %s454_s29, %s448_s27 }
  0x1c   : > { %p457_p3 = por %p456_p2, %p455_p1 }
  0x1e   : > { %p458_p5 = pnand %p457_p3, %p451_p0 }
  0x8f   : > { %v233_v3 = vpop.permute.xlu0 %232 }
  0x90   : > { %v235_v5 = vmul.f32 %v233_v3, %v228_v4 }
  0x93   : > { %v240_v6 = vpop.permute.xlu0 %239 }
  0x94   : > { %v242_v7 = vadd.f32 %v240_v6, %v235_v5 }
  0x96   : > { %v243_v8 = vmax.f32 %v242_v7, 0.0 }
  0x98   : > { %v244_v9 = vmin.f32 %v243_v8, 6.0 }
  0x9a   : > { %v382_v10 = vmul.f32 -1.442695, %v244_v9 }
  0x9c   : > { %444 = vpow2.f32 %v382_v10 }
  0xa6   : > { %v445_v11 = vpop.eup %444 }
  0xa7   : > { %v248_v12 = vadd.f32 1.0, %v445_v11 }
  0xa9   : > { %446 = vrcp.f32 %v248_v12 }
  0xb3   : > { %v447_v13 = vpop.eup %446 }
  0xb4   : > { %251 = vst [vmem:[%s211_s11] sm:$0xff] %v447_v13 }
  0xb5   : > { %461 = shalt.err (!%p458_p5)
}
  0xb6   : > { %s462_s30 = scalar_lea.hbm %s621_s23, 128  ;;  %s466_s6 = scalar_lea.hbm %s671_s3, 256 }
  0xb7   : > { %p463_p6 = scmp.ne.s32.totalorder %s621_s23, %s462_s30  ;;  %p467_p10 = scmp.lt.u32.totalorder %s621_s23, %s671_s3 }
  0xb8   : > { %p468_p11 = scmp.lt.u32.totalorder %s466_s6, %s462_s30  ;;  %p470_p13 = scmp.lt.u32.totalorder %s462_s30, %s621_s23 }
  0xb9   : > { %p464_p7 = pnand %p463_p6, %p590_p4 }
  0xba   : > { %p469_p12 = por %p468_p11, %p467_p10 }
  0xbb   : > { %p465_p9 = pneg %p464_p7 }
  0xbc   : > { %p471_p0 = por %p470_p13, %p469_p12 }
  0xbe   : > { %p472_p1 = pnand %p471_p0, %p465_p9 }
  0xc0   : > { %475 = shalt.err (!%p472_p1)
}
  0xc1   : > { %387 = dma.vmem_to_hbm [thread:$0]  (%p590_p4), %s623_s18, 128, %s621_s23, %s253_s26  }
  0xc2 PF: > { %p393_p2 = scmp.ge.s32.totalorder %s526_s17, 2  ;;  %s280_s9 = sand.u32 1, %s506_s12  }
  0xc3   : > { %s281_s10 = scalar_lea.sflag [#allocation3], %s280_s9 }
  0xc4   : > { %p390_p3 = pnand %p393_p2, %p597_p8 }
  0xc6   : > { %501 = dma.done.wait (!%p390_p3), %s281_s10, 128  }
  0xc7   : > { %503 = vsyncadd (!%p390_p3), %s281_s10, 4294967168  ;;  %s16_s17 = sadd.s32 1, %s526_s17   ;;  %s674_s12 = smov %s510_s13 }
  0xc8   : > { %p13_p5 = scmp.ge.s32.totalorder %s16_s17, 4   ;;  %s675_s13 = smov %s514_s14 }
  0xc9   : > { %s676_s14 = smov %s603_s25  ;;  %s677_s15 = smov %s522_s16 }
  0xca   : > { %s678_s16 = smov %s680_s20  ;;  %15 = sbr.rel (!%p13_p5) target bundleno = 4 (0x4), region = 73 }
  0xd1   :  { %286 = vsyncpa [#allocation3], 1 }
  0xd2   :  { %288 = vsyncpa [#allocation3 + $0x1], 1 }

</bundles_post_ra>
